<compile_context>
chip_gen: v7x
topology: tpu7x:2x2x1
jax: 0.10.0
libtpu: 0.0.40
codegen_flags: <defaults>
</compile_context>

<pallas_src>
import functools

import jax
import jax.numpy as jnp
import numpy as np
from jax.experimental import pallas as pl
from jax.experimental.pallas import tpu as pltpu


_MIB = 1024 * 1024


def _chip_budgets():
    """Per-generation scoped-VMEM budget and fused-path node threshold."""
    cap = 64 * _MIB
    try:
        cap = int(getattr(pltpu.get_tpu_info(), "vmem_capacity_bytes", cap))
    except Exception:
        pass
    vmem_limit = min(cap // 2, 64 * _MIB)      # 64 MiB on v5e/v6e, 32 MiB on v7x
    fused_max_n = 1024 if vmem_limit <= 32 * _MIB else 1536
    return vmem_limit, fused_max_n


_VMEM_LIMIT, _FUSED_MAX_N = _chip_budgets()
_TILE_M = 256                      # row tile (128-aligned, MXU friendly)


# ---------------------------------------------------------------------------
# Kernels
# ---------------------------------------------------------------------------
def _fused_encoder_kernel(x_ref, a_ref, dinv_ref, w12_ref, b12_ref, wgg_ref,
                          bg2_ref, out_ref, *, c):
    """Whole forward pass for small graphs (everything VMEM-resident).

    A is the un-normalized adjacency (A+I edge counts); the symmetric D^-1/2
    scaling is folded into HG (column half) and the output (row half).
    """
    # packed projection: hz = [linear1(x) | linear2(x)]          (N, c2p)
    hz = jnp.dot(x_ref[...], w12_ref[...],
                 preferred_element_type=jnp.float32) + b12_ref[...]

    # F.normalize(p=2, dim=1) on the z half (columns [c, 2c)) only.
    cols = jax.lax.broadcasted_iota(jnp.int32, hz.shape, 1)
    is_z = jnp.logical_and(cols >= c, cols < 2 * c)
    sumsq = jnp.sum(jnp.where(is_z, hz * hz, 0.0), axis=1, keepdims=True)
    inv = jax.lax.rsqrt(jnp.maximum(sumsq, 1e-24))   # == 1 / max(||z||, 1e-12)
    hz = jnp.where(is_z, hz * inv, hz)

    # packed GCN linear: hg = [h @ wg | (z/||z||) @ (s*wg)], D^-1/2 col fold.
    hg = jnp.dot(hz.astype(wgg_ref.dtype), wgg_ref[...],
                 preferred_element_type=jnp.float32) * dinv_ref[...]

    # packed propagation + D^-1/2 row fold + bias.
    prop = jnp.dot(a_ref[...], hg.astype(a_ref.dtype),
                   preferred_element_type=jnp.float32)
    out_ref[...] = (prop * dinv_ref[...] + bg2_ref[...]).astype(out_ref.dtype)


def _proj_kernel(x_ref, w12_ref, b12_ref, wgg_ref, dinv_ref, hg_ref, *, c):
    """Stage 1 of the tiled path: per-row-tile fused projection -> HG.

    HG already carries the column half of D^-1/2, so stage 2 only streams the
    raw (bf16-lossless) adjacency counts and applies the row half at the end.
    """
    hz = jnp.dot(x_ref[...], w12_ref[...],
                 preferred_element_type=jnp.float32) + b12_ref[...]
    cols = jax.lax.broadcasted_iota(jnp.int32, hz.shape, 1)
    is_z = jnp.logical_and(cols >= c, cols < 2 * c)
    sumsq = jnp.sum(jnp.where(is_z, hz * hz, 0.0), axis=1, keepdims=True)
    inv = jax.lax.rsqrt(jnp.maximum(sumsq, 1e-24))
    hz = jnp.where(is_z, hz * inv, hz)
    hg = jnp.dot(hz.astype(wgg_ref.dtype), wgg_ref[...],
                 preferred_element_type=jnp.float32)
    hg_ref[...] = (hg * dinv_ref[...]).astype(hg_ref.dtype)


def _prop_kernel(a_ref, hg_ref, dinv_ref, bg2_ref, out_ref, *, tile_k,
                 hg_resident):
    """Stage 2: OUT = D^-1/2 (A+I) HG + [bg | bg]  (rows parallel, k reduce).

    Accumulates directly into the resident output block (no VMEM scratch)."""
    k = pl.program_id(1)

    @pl.when(k == 0)
    def _():
        out_ref[...] = jnp.zeros_like(out_ref)

    if hg_resident:
        start = pl.multiple_of(k * tile_k, tile_k)
        hg = hg_ref[pl.ds(start, tile_k), :]
    else:
        hg = hg_ref[...]

    out_ref[...] += jnp.dot(a_ref[...].astype(hg.dtype), hg,
                            preferred_element_type=jnp.float32)

    @pl.when(k == pl.num_programs(1) - 1)
    def _():
        out_ref[...] = out_ref[...] * dinv_ref[...] + bg2_ref[...]


# ---------------------------------------------------------------------------
# Glue: dense adjacency + degree normalization vector (PyG GCNConv defaults:
# add_self_loops=True, symmetric norm; duplicate edges keep scatter-add
# multiplicity).
# TODO(synk): a genuinely sparse formulation (neighbor lists +
# PrefetchScalarGridSpec-driven row gathers) would avoid the dense O(N^2) A.
# ---------------------------------------------------------------------------
def build_graph(edge_index, num_nodes):
    src = edge_index[0]          # message source j
    dst = edge_index[1]          # message target i (aggregation index)
    loop = jnp.arange(num_nodes, dtype=edge_index.dtype)
    src = jnp.concatenate([src, loop])
    dst = jnp.concatenate([dst, loop])
    a = jnp.zeros((num_nodes, num_nodes), jnp.float32).at[dst, src].add(1.0)
    deg = jnp.zeros((num_nodes,), jnp.float32).at[dst].add(1.0)
    dinv = jnp.where(deg > 0, jax.lax.rsqrt(deg), 0.0)
    return a, dinv


def _round_up(v, m):
    return ((v + m - 1) // m) * m


def _pad2(a, rows, cols=None):
    r = rows - a.shape[0]
    c = 0 if cols is None else cols - a.shape[1]
    if r or c:
        a = jnp.pad(a, ((0, r), (0, c)))
    return a


def encoder_forward(x, edge_index, params, scaling_factor,
                    compute_dtype=jnp.float32, fused_max_n=None):
    n, cin = x.shape
    c = params["w1"].shape[1]
    c2p = _round_up(2 * c, 128)     # lane-dense packed channel width
    cin_p = _round_up(cin, 128)     # lane-dense contraction width
    if fused_max_n is None:
        fused_max_n = _FUSED_MAX_N

    a, dinv = build_graph(edge_index, n)

    # ---- pack both branches along lanes, zero-padded to 128-lane width ----
    s = jnp.asarray(scaling_factor, jnp.float32)
    w12 = jnp.zeros((cin_p, c2p), jnp.float32)
    w12 = w12.at[:cin, :c].set(params["w1"]).at[:cin, c:2 * c].set(params["w2"])
    b12 = jnp.zeros((1, c2p), jnp.float32)
    b12 = b12.at[:, :c].set(params["b1"]).at[:, c:2 * c].set(params["b2"])
    wgg = jnp.zeros((c2p, c2p), jnp.float32)        # blockdiag(wg, s*wg)
    wgg = wgg.at[:c, :c].set(params["wg"]).at[c:2 * c, c:2 * c].set(params["wg"] * s)
    bg2 = jnp.zeros((1, c2p), jnp.float32)
    bg2 = bg2.at[:, :c].set(params["bg"]).at[:, c:2 * c].set(params["bg"])

    w12 = w12.astype(compute_dtype)
    wgg = wgg.astype(compute_dtype)

    if n <= fused_max_n:
        # ---------- small-N fast path: one fused VMEM-resident kernel -------
        n_pad = _round_up(n, 8)
        x_p = _pad2(x, n_pad, cin_p).astype(compute_dtype)
        a_p = _pad2(a, n_pad, n_pad).astype(compute_dtype)
        dinv_p = _pad2(dinv[:, None], n_pad)
        vmem = pl.BlockSpec(memory_space=pltpu.MemorySpace.VMEM)
        out = pl.pallas_call(
            functools.partial(_fused_encoder_kernel, c=c),
            out_shape=jax.ShapeDtypeStruct((n_pad, c2p), jnp.float32),
            in_specs=[vmem] * 7,
            out_specs=vmem,
            compiler_params=pltpu.CompilerParams(vmem_limit_bytes=_VMEM_LIMIT),
        )(x_p, a_p, dinv_p, w12, b12, wgg, bg2)
    else:
        # ---------- large-N path: tiled, A never fully in VMEM --------------
        tile_m = _TILE_M
        n_pad = _round_up(n, tile_m)
        x_p = _pad2(x, n_pad, cin_p).astype(compute_dtype)
        dinv_p = _pad2(dinv[:, None], n_pad)
        # Un-normalized A+I counts are small integers -> exact in bf16; this
        # halves the dominant O(N^2) HBM stream of stage 2.
        a_p = _pad2(a, n_pad, n_pad).astype(jnp.bfloat16)

        # stage 1: HG = D^-1/2 * ([lin1(x) | norm(lin2(x))] @ blockdiag(wg, s*wg))
        hg = pl.pallas_call(
            functools.partial(_proj_kernel, c=c),
            out_shape=jax.ShapeDtypeStruct((n_pad, c2p), compute_dtype),
            grid=(n_pad // tile_m,),
            in_specs=[
                pl.BlockSpec((tile_m, cin_p), lambda i: (i, 0)),
                pl.BlockSpec((cin_p, c2p), lambda i: (0, 0)),
                pl.BlockSpec((1, c2p), lambda i: (0, 0)),
                pl.BlockSpec((c2p, c2p), lambda i: (0, 0)),
                pl.BlockSpec((tile_m, 1), lambda i: (i, 0)),
            ],
            out_specs=pl.BlockSpec((tile_m, c2p), lambda i: (i, 0)),
            compiler_params=pltpu.CompilerParams(
                dimension_semantics=("parallel",),
                vmem_limit_bytes=_VMEM_LIMIT),
        )(x_p, w12, b12, wgg, dinv_p)

        # stage 2 tiling: HG fully VMEM-resident when small (DMA'd once), and
        # the A reduction (k) tile as wide as the VMEM budget allows so the
        # per-grid-step overhead stops dominating the HBM-bound stream of A.
        hg_bytes = n_pad * c2p * jnp.dtype(compute_dtype).itemsize
        hg_resident = 2 * hg_bytes <= _VMEM_LIMIT // 4
        a_block_budget = _VMEM_LIMIT // 2
        tile_k = tile_m
        for cand in (n_pad, 4096, 2048, 1024, 512, 256):
            if cand <= n_pad and n_pad % cand == 0 and tile_m * cand * 8 <= a_block_budget:
                tile_k = cand
                break

        if hg_resident:
            hg_spec = pl.BlockSpec((n_pad, c2p), lambda i, k: (0, 0))
        else:
            hg_spec = pl.BlockSpec((tile_k, c2p), lambda i, k: (k, 0))

        out = pl.pallas_call(
            functools.partial(_prop_kernel, tile_k=tile_k,
                              hg_resident=hg_resident),
            out_shape=jax.ShapeDtypeStruct((n_pad, c2p), jnp.float32),
            grid=(n_pad // tile_m, n_pad // tile_k),
            in_specs=[
                pl.BlockSpec((tile_m, tile_k), lambda i, k: (i, k)),
                hg_spec,
                pl.BlockSpec((tile_m, 1), lambda i, k: (i, 0)),
                pl.BlockSpec((1, c2p), lambda i, k: (0, 0)),
            ],
            out_specs=pl.BlockSpec((tile_m, c2p), lambda i, k: (i, 0)),
            compiler_params=pltpu.CompilerParams(
                dimension_semantics=("parallel", "arbitrary"),
                vmem_limit_bytes=_VMEM_LIMIT),
        )(a_p, hg, dinv_p, bg2)

    out_xp = out[:n, :c]        # branch 1: propagate(linear1(x))             -> x_
    out_x = out[:n, c:2 * c]    # branch 2: propagate(normalize(linear2(x))*s) -> x
    return out_x, out_xp


# ---------------------------------------------------------------------------
# Deterministic parameter init (shapes from the module __init__); weights are
# stored pre-transposed so the kernels compute x @ W + b.
# ---------------------------------------------------------------------------
def init_params(key, in_channels, out_channels):
    k1, k2, k3, k4, k5, k6 = jax.random.split(key, 6)
    s_in = 1.0 / np.sqrt(in_channels)
    s_out = 1.0 / np.sqrt(out_channels)
    return {
        "w1": jax.random.uniform(k1, (in_channels, out_channels), jnp.float32, -s_in, s_in),
        "b1": jax.random.uniform(k2, (1, out_channels), jnp.float32, -s_in, s_in),
        "w2": jax.random.uniform(k3, (in_channels, out_channels), jnp.float32, -s_in, s_in),
        "b2": jax.random.uniform(k4, (1, out_channels), jnp.float32, -s_in, s_in),
        "wg": jax.random.uniform(k5, (out_channels, out_channels), jnp.float32, -s_out, s_out),
        "bg": jax.random.uniform(k6, (1, out_channels), jnp.float32, -s_out, s_out),
    }


def encoder_reference(x, a, dinv, params, scaling_factor):
    """Pure-JAX reference matching the PyTorch forward."""
    a_hat = dinv[:, None] * a * dinv[None, :]
    h = x @ params["w1"] + params["b1"]
    x_ = a_hat @ (h @ params["wg"]) + params["bg"]
    z = x @ params["w2"] + params["b2"]
    norm = jnp.sqrt(jnp.sum(z * z, axis=1, keepdims=True))
    z = z / jnp.maximum(norm, 1e-12) * scaling_factor
    xx = a_hat @ (z @ params["wg"]) + params["bg"]
    return xx, x_


if __name__ == "__main__":
    key = jax.random.PRNGKey(0)
    kx, kp = jax.random.split(key)

    # ---- small demo: fused single-kernel path ------------------------------
    num_nodes, in_channels, out_channels = 8, 16, 32
    scaling_factor = 1.8
    x = jax.random.normal(kx, (num_nodes, in_channels), jnp.float32)
    src = jnp.array([0, 1, 2, 3, 4, 5, 6, 7, 0, 2, 4, 6], dtype=jnp.int32)
    dst = jnp.array([1, 2, 3, 4, 5, 6, 7, 0, 4, 6, 0, 2], dtype=jnp.int32)
    edge_index = jnp.stack([src, dst], axis=0)
    params = init_params(kp, in_channels, out_channels)

    out_x, out_xp = encoder_forward(x, edge_index, params, scaling_factor)
    jax.block_until_ready((out_x, out_xp))
    assert out_x.shape == (num_nodes, out_channels)
    assert out_xp.shape == (num_nodes, out_channels)
    a1, d1 = build_graph(edge_index, num_nodes)
    ref_x, ref_xp = encoder_reference(x, a1, d1, params, scaling_factor)
    assert jnp.allclose(out_x, ref_x, rtol=2e-2, atol=2e-2)
    assert jnp.allclose(out_xp, ref_xp, rtol=2e-2, atol=2e-2)

    # ---- tiled two-stage path (forced via fused_max_n=0) -------------------
    kx2, kp2, ks, kd = jax.random.split(jax.random.PRNGKey(1), 4)
    n2, cin2, cout2 = 600, 48, 32
    x2 = jax.random.normal(kx2, (n2, cin2), jnp.float32)
    src2 = jax.random.randint(ks, (4 * n2,), 0, n2, dtype=jnp.int32)
    dst2 = jax.random.randint(kd, (4 * n2,), 0, n2, dtype=jnp.int32)
    edge_index2 = jnp.stack([src2, dst2], axis=0)
    params2 = init_params(kp2, cin2, cout2)

    out_x2, out_xp2 = encoder_forward(x2, edge_index2, params2, 0.7,
                                      fused_max_n=0)
    jax.block_until_ready((out_x2, out_xp2))
    a2, d2 = build_graph(edge_index2, n2)
    ref_x2, ref_xp2 = encoder_reference(x2, a2, d2, params2, 0.7)
    assert jnp.allclose(out_x2, ref_x2, rtol=2e-2, atol=2e-2)
    assert jnp.allclose(out_xp2, ref_xp2, rtol=2e-2, atol=2e-2)

    # ---- bf16 operand opt-in (v6e/v7x MXU fast path): smoke test -----------
    out_x3, out_xp3 = encoder_forward(x2, edge_index2, params2, 0.7,
                                      compute_dtype=jnp.bfloat16,
                                      fused_max_n=0)
    jax.block_until_ready((out_x3, out_xp3))
    assert bool(jnp.all(jnp.isfinite(out_x3))) and bool(jnp.all(jnp.isfinite(out_xp3)))

    print("KERNEL_OK")
</pallas_src>

<mosaic_0001>
module attributes {stable_mosaic.version = 11 : i64} {
  func.func @_fused_encoder_kernel(%arg0: memref<8x128xf32, #tpu.memory_space<vmem>>, %arg1: memref<8x8xf32, #tpu.memory_space<vmem>>, %arg2: memref<8x1xf32, #tpu.memory_space<vmem>>, %arg3: memref<128x128xf32, #tpu.memory_space<vmem>>, %arg4: memref<1x128xf32, #tpu.memory_space<vmem>>, %arg5: memref<128x128xf32, #tpu.memory_space<vmem>>, %arg6: memref<1x128xf32, #tpu.memory_space<vmem>>, %arg7: memref<8x128xf32, #tpu.memory_space<vmem>>) attributes {dimension_semantics = [], scalar_prefetch = 0 : i64, scratch_operands = 0 : i64, tpu.core_type = #tpu.core_type<tc>} {
    %c0 = arith.constant 0 : index
    %c0_0 = arith.constant 0 : index
    %0 = vector.load %arg0[%c0, %c0_0] : memref<8x128xf32, #tpu.memory_space<vmem>>, vector<8x128xf32>
    %c0_1 = arith.constant 0 : index
    %c0_2 = arith.constant 0 : index
    %1 = vector.load %arg3[%c0_1, %c0_2] : memref<128x128xf32, #tpu.memory_space<vmem>>, vector<128x128xf32>
    %cst = arith.constant dense<0.000000e+00> : vector<8x128xf32>
    %2 = tpu.matmul %0, %1, %cst {dimension_numbers = #tpu.dot_dimension_numbers<[1], [0], [0], [1], [0, 0, 1, 1], [], []>} : vector<8x128xf32>, vector<128x128xf32>, vector<8x128xf32> -> vector<8x128xf32>
    %c0_3 = arith.constant 0 : index
    %c0_4 = arith.constant 0 : index
    %3 = vector.load %arg4[%c0_3, %c0_4] : memref<1x128xf32, #tpu.memory_space<vmem>>, vector<1x128xf32>
    %4 = vector.broadcast %3 : vector<1x128xf32> to vector<8x128xf32>
    %5 = arith.addf %2, %4 : vector<8x128xf32>
    %6 = tpu.iota {dimensions = array<i32: 1>} : vector<8x128xi32>
    %c32_i32 = arith.constant 32 : i32
    %7 = vector.broadcast %c32_i32 : i32 to vector<8x128xi32>
    %8 = arith.cmpi sge, %6, %7 : vector<8x128xi32>
    %c64_i32 = arith.constant 64 : i32
    %9 = vector.broadcast %c64_i32 : i32 to vector<8x128xi32>
    %10 = arith.cmpi slt, %6, %9 : vector<8x128xi32>
    %11 = arith.andi %8, %10 : vector<8x128xi1>
    %12 = arith.mulf %5, %5 : vector<8x128xf32>
    %cst_5 = arith.constant 0.000000e+00 : f32
    %13 = vector.broadcast %cst_5 : f32 to vector<8x128xf32>
    %14 = arith.select %11, %12, %13 : vector<8x128xi1>, vector<8x128xf32>
    %cst_6 = arith.constant dense<0.000000e+00> : vector<8xf32>
    %15 = vector.multi_reduction <add>, %14, %cst_6 [1] : vector<8x128xf32> to vector<8xf32>
    %16 = vector.shape_cast %15 : vector<8xf32> to vector<8x1xf32>
    %cst_7 = arith.constant 1.000000e-24 : f32
    %17 = vector.broadcast %cst_7 : f32 to vector<8x1xf32>
    %18 = arith.maximumf %16, %17 : vector<8x1xf32>
    %19 = math.rsqrt %18 : vector<8x1xf32>
    %20 = vector.broadcast %19 : vector<8x1xf32> to vector<8x128xf32>
    %21 = arith.mulf %5, %20 : vector<8x128xf32>
    %22 = arith.select %11, %21, %5 : vector<8x128xi1>, vector<8x128xf32>
    %c0_8 = arith.constant 0 : index
    %c0_9 = arith.constant 0 : index
    %23 = vector.load %arg5[%c0_8, %c0_9] : memref<128x128xf32, #tpu.memory_space<vmem>>, vector<128x128xf32>
    %cst_10 = arith.constant dense<0.000000e+00> : vector<8x128xf32>
    %24 = tpu.matmul %22, %23, %cst_10 {dimension_numbers = #tpu.dot_dimension_numbers<[1], [0], [0], [1], [0, 0, 1, 1], [], []>} : vector<8x128xf32>, vector<128x128xf32>, vector<8x128xf32> -> vector<8x128xf32>
    %c0_11 = arith.constant 0 : index
    %c0_12 = arith.constant 0 : index
    %25 = vector.load %arg2[%c0_11, %c0_12] : memref<8x1xf32, #tpu.memory_space<vmem>>, vector<8x1xf32>
    %26 = vector.broadcast %25 : vector<8x1xf32> to vector<8x128xf32>
    %27 = arith.mulf %24, %26 : vector<8x128xf32>
    %c0_13 = arith.constant 0 : index
    %c0_14 = arith.constant 0 : index
    %28 = vector.load %arg1[%c0_13, %c0_14] : memref<8x8xf32, #tpu.memory_space<vmem>>, vector<8x8xf32>
    %cst_15 = arith.constant dense<0.000000e+00> : vector<8x128xf32>
    %29 = tpu.matmul %28, %27, %cst_15 {dimension_numbers = #tpu.dot_dimension_numbers<[1], [0], [0], [1], [0, 0, 1, 1], [], []>} : vector<8x8xf32>, vector<8x128xf32>, vector<8x128xf32> -> vector<8x128xf32>
    %c0_16 = arith.constant 0 : index
    %c0_17 = arith.constant 0 : index
    %30 = vector.load %arg2[%c0_16, %c0_17] : memref<8x1xf32, #tpu.memory_space<vmem>>, vector<8x1xf32>
    %31 = vector.broadcast %30 : vector<8x1xf32> to vector<8x128xf32>
    %32 = arith.mulf %29, %31 : vector<8x128xf32>
    %c0_18 = arith.constant 0 : index
    %c0_19 = arith.constant 0 : index
    %33 = vector.load %arg6[%c0_18, %c0_19] : memref<1x128xf32, #tpu.memory_space<vmem>>, vector<1x128xf32>
    %34 = vector.broadcast %33 : vector<1x128xf32> to vector<8x128xf32>
    %35 = arith.addf %32, %34 : vector<8x128xf32>
    %c0_20 = arith.constant 0 : index
    %c0_21 = arith.constant 0 : index
    %36 = vector.load %arg7[%c0_20, %c0_21] : memref<8x128xf32, #tpu.memory_space<vmem>>, vector<8x128xf32>
    tpu.vector_store %arg7[%c0_20, %c0_21], %35 {strides = array<i32>} : memref<8x128xf32, #tpu.memory_space<vmem>>, vector<8x128xf32>,
    return
  }
}

</mosaic_0001>

<bundles_post_ra>
// kernel: tpu_custom_call.1
= control target key start
LH: loop header
LB: loop body
LE: loop exit
PB: predicated region body
PF: predicated region fallthrough
CT: control target
= control target key end

     0   :  { %12 = vsyncpa [#allocation3], 0  ;;  %s779_s0 = inlined_call_operand.vmem [shape: f32[8,128], index: 0, kind: input, shape index: {}]   ;;  %s780_s1 = inlined_call_operand.hbm [shape: f32[8,8], index: 1, kind: input, shape index: {}]   ;;  %s781_s2 = inlined_call_operand.vmem [shape: f32[8,1], index: 2, kind: input, shape index: {}]   ;;  %s782_s3 = inlined_call_operand.hbm [shape: f32[128,128], index: 3, kind: input, shape index: {}]   ;;  %s783_s4 = inlined_call_operand.vmem [shape: f32[1,128], index: 4, kind: input, shape index: {}]   ;;  %s784_s5 = inlined_call_operand.hbm [shape: f32[128,128], index: 5, kind: input, shape index: {}]   ;;  %s785_s6 = inlined_call_operand.vmem [shape: f32[1,128], index: 6, kind: input, shape index: {}]   ;;  %s786_s7 = inlined_call_operand.hbm [shape: f32[8,128], index: 7, kind: output, shape index: {}]  }
   0x1   :  { %13 = vsyncpa [#allocation6], 0 }
   0x2   :  { %14 = vsyncpa [#allocation4], 0  ;;  %s636_s24 = smov [#allocation5]   ;;  %s542_s28 = scalar_lea.hbm %s782_s3, 2048 }
   0x3   :  { %s34_s25 = sshll.u32 %s636_s24, 4  ;;  %p543_p0 = scmp.ne.s32.totalorder %s782_s3, %s542_s28  ;;  %s35_s25 = int_to_ptr.vmem [resolvable:$true] %s34_s25 }
   0x4   :  { %p546_p1 = scmp.lt.u32.totalorder %s542_s28, %s782_s3 }
   0x6   :  { %p548_p2 = pnand %p546_p1, %p543_p0 }
   0x8   :  { %551 = shalt.err (!%p548_p2)
}
   0x9   :  { %s552_s10 = scalar_lea.vmem %s35_s25, 2048  ;;  %p557_p4 = scmp.lt.s32.totalorder %s35_s25, %s35_s25 }
   0xa   :  { %p553_p3 = scmp.ne.s32.totalorder %s35_s25, %s552_s10  ;;  %p558_p5 = scmp.lt.s32.totalorder %s552_s10, %s552_s10 }
   0xc   :  { %p559_p6 = por %p558_p5, %p557_p4 }
   0xe   :  { %p560_p7 = pnand %p559_p6, %p553_p3 }
  0x10   :  { %563 = shalt.err (!%p560_p7)
}
  0x11   :  { %s637_s11 = smov 128   ;;  %s638_s12 = smov 8  }
  0x12   :  { %40 = dma.hbm_to_vmem [thread:$0]  %s782_s3, 2048, %s35_s25, [#allocation6], %s637_s11, %s637_s11, %s638_s12  }
  0x13   :  { %s639_s15 = smov [#allocation2]   ;;  %s640_s17 = smov [#allocation7]  }
  0x14   :  { %s23_s16 = sshll.u32 %s639_s15, 4  ;;  %s48_s18 = sshll.u32 %s640_s17, 4  ;;  %s24_s16 = int_to_ptr.vmem [resolvable:$true] %s23_s16  ;;  %s49_s18 = int_to_ptr.vmem [resolvable:$true] %s48_s18 }
  0x15   :  { %s564_s21 = scalar_lea.hbm %s780_s1, 128 }
  0x16   :  { %p565_p8 = scmp.ne.s32.totalorder %s780_s1, %s564_s21  ;;  %p568_p9 = scmp.lt.u32.totalorder %s564_s21, %s780_s1 }
  0x18   :  { %p570_p10 = pnand %p568_p9, %p565_p8 }
  0x1a   :  { %573 = shalt.err (!%p570_p10)
}
  0x1b   :  { %s574_s3 = scalar_lea.vmem %s24_s16, 128  ;;  %p579_p12 = scmp.lt.s32.totalorder %s24_s16, %s24_s16 }
  0x1c   :  { %p575_p11 = scmp.ne.s32.totalorder %s24_s16, %s574_s3  ;;  %p580_p13 = scmp.lt.s32.totalorder %s574_s3, %s574_s3 }
  0x1e   :  { %p581_p0 = por %p580_p13, %p579_p12 }
  0x20   :  { %p582_p1 = pnand %p581_p0, %p575_p11 }
  0x22   :  { %585 = shalt.err (!%p582_p1)
}
  0x23   :  { %26 = dma.hbm_to_vmem [thread:$0]  %s780_s1, 128, %s24_s16, [#allocation3]  }
  0x24   :  { %s586_s30 = scalar_lea.hbm %s784_s5, 2048 }
  0x25   :  { %p587_p2 = scmp.ne.s32.totalorder %s784_s5, %s586_s30  ;;  %p590_p3 = scmp.lt.u32.totalorder %s586_s30, %s784_s5 }
  0x27   :  { %p592_p4 = pnand %p590_p3, %p587_p2 }
  0x29   :  { %595 = shalt.err (!%p592_p4)
}
  0x2a   :  { %s596_s14 = scalar_lea.vmem %s49_s18, 2048  ;;  %p601_p6 = scmp.lt.s32.totalorder %s49_s18, %s49_s18 }
  0x2b   :  { %p597_p5 = scmp.ne.s32.totalorder %s49_s18, %s596_s14  ;;  %p602_p7 = scmp.lt.s32.totalorder %s596_s14, %s596_s14 }
  0x2d   :  { %p603_p8 = por %p602_p7, %p601_p6 }
  0x2f   :  { %p604_p9 = pnand %p603_p8, %p597_p5 }
  0x31   :  { %607 = shalt.err (!%p604_p9)
}
  0x32   :  { %54 = dma.hbm_to_vmem [thread:$0]  %s784_s5, 2048, %s49_s18, [#allocation6], %s637_s11, %s637_s11, %s638_s12  }
  0x33   :  { %630 = dma.done.wait [#allocation3], 128  }
  0x34   :  { %631 = vsyncadd [#allocation3], 4294967168 }
  0x35   :  { %632 = dma.done.wait [#allocation6], 4096  }
  0x36   :  { %633 = vsyncadd [#allocation6], 4294963200  ;;  %v641_v0 = vmov 0.0|0.0   ;;  %vm642_vm0 = vmmov 0   ;;  %v643_v1 = vmov 0.0   ;;  %v67_v2 = vld [vmem:[#allocation5] sm:$0xff]  ;;  %v160_v39 = vlaneseq }
  0x37   :  { %481 = vmatprep.subr.bf16.mxu0 %v641_v0  ;;  %438 = vmatprep.mubr.msk.f32.mxu0 %vm642_vm0, %v643_v1  ;;  %v68_v3 = vld [vmem:[#allocation5 + $0x8] sm:$0xff]  ;;  %v69_v4 = vld [vmem:[#allocation5 + $0x10] sm:$0xff]  ;;  %v70_v6 = vld [vmem:[#allocation5 + $0x18] sm:$0xff]  ;;  %v644_v61 = vmov 0   ;;  %vm267_vm4 = vcmask 64512   ;;  %s645_s18 = smov [#allocation8]  }
  0x38   :  { %505 = vmatprep.subr.bf16.mxu1 %v641_v0  ;;  %473 = vmatprep.mubr.msk.f32.mxu1 %vm642_vm0, %v643_v1  ;;  %v482_v5 = vpack.c.bf16 %v68_v3, %v67_v2  ;;  %v485_v7 = vpack.c.bf16 %v70_v6, %v69_v4  ;;  %v71_v8 = vld [vmem:[#allocation5 + $0x20] sm:$0xff]  ;;  %v72_v9 = vld [vmem:[#allocation5 + $0x28] sm:$0xff]  ;;  %v73_v11 = vld [vmem:[#allocation5 + $0x30] sm:$0xff]  ;;  %v161_v40 = vand.u32 127, %v160_v39  ;;  %s357_s19 = sshll.u32 %s645_s18, 4  ;;  %s358_s19 = int_to_ptr.vmem [resolvable:$true] %s357_s19 }
  0x39   :  { %v488_v10 = vpack.c.bf16 %v72_v9, %v71_v8  ;;  %v74_v12 = vld [vmem:[#allocation5 + $0x38] sm:$0xff]  ;;  %v75_v14 = vld [vmem:[#allocation5 + $0x40] sm:$0xff]  ;;  %v76_v15 = vld [vmem:[#allocation5 + $0x48] sm:$0xff]  ;;  %539 = vset.pattern.permute.xlu0 %v644_v61  ;;  %s608_s20 = scalar_lea.vmem %s358_s19, 128  ;;  %p613_p11 = scmp.lt.s32.totalorder %s358_s19, %s358_s19 }
  0x3a   :  { %483 = vmatpush3.bf16.msra.mxu0 %v482_v5  ;;  %v491_v13 = vpack.c.bf16 %v74_v12, %v73_v11  ;;  %v494_v16 = vpack.c.bf16 %v76_v15, %v75_v14  ;;  %v77_v17 = vld [vmem:[#allocation5 + $0x50] sm:$0xff]  ;;  %v78_v18 = vld [vmem:[#allocation5 + $0x58] sm:$0xff]  ;;  %v79_v20 = vld [vmem:[#allocation5 + $0x60] sm:$0xff]  ;;  %vm162_vm1 = vcmp.ge.s32.totalorder %v161_v40, 32  ;;  %vm163_vm2 = vcmp.lt.s32.totalorder %v161_v40, 64  ;;  %p609_p10 = scmp.ne.s32.totalorder %s358_s19, %s608_s20  ;;  %p614_p12 = scmp.lt.s32.totalorder %s608_s20, %s608_s20 }
  0x3b   :  { %484 = vmatprep.subr.bf16.mxu0 %v641_v0  ;;  %v497_v19 = vpack.c.bf16 %v78_v18, %v77_v17  ;;  %v80_v21 = vld [vmem:[#allocation5 + $0x68] sm:$0xff]  ;;  %v81_v23 = vld [vmem:[#allocation5 + $0x70] sm:$0xff]  ;;  %v82_v24 = vld [vmem:[#allocation5 + $0x78] sm:$0xff] }
  0x3c   :  { %v500_v22 = vpack.c.bf16 %v80_v21, %v79_v20  ;;  %v503_v25 = vpack.c.bf16 %v82_v24, %v81_v23  ;;  %v66_v26 = vld [vmem:[%s779_s0] sm:$0xff]  ;;  %v173_v27 = vld [vmem:[#allocation7] sm:$0xff]  ;;  %v174_v28 = vld [vmem:[#allocation7 + $0x8] sm:$0xff]  ;;  %p615_p13 = por %p614_p12, %p613_p11 }
  0x3d   :  { %v175_v29 = vld [vmem:[#allocation7 + $0x10] sm:$0xff]  ;;  %v506_v30 = vpack.c.bf16 %v174_v28, %v173_v27  ;;  %v176_v31 = vld [vmem:[#allocation7 + $0x18] sm:$0xff]  ;;  %v177_v33 = vld [vmem:[#allocation7 + $0x20] sm:$0xff] }
  0x3e   :  { %486 = vmatpush3.bf16.msra.mxu0 %v485_v7  ;;  %v509_v32 = vpack.c.bf16 %v176_v31, %v175_v29  ;;  %v178_v34 = vld [vmem:[#allocation7 + $0x28] sm:$0xff]  ;;  %v179_v36 = vld [vmem:[#allocation7 + $0x30] sm:$0xff]  ;;  %v180_v37 = vld [vmem:[#allocation7 + $0x38] sm:$0xff]  ;;  %p616_p0 = pnand %p615_p13, %p609_p10 }
  0x3f   :  { %487 = vmatprep.subr.bf16.mxu0 %v641_v0  ;;  %507 = vmatpush3.bf16.msra.mxu1 %v506_v30  ;;  %v512_v35 = vpack.c.bf16 %v178_v34, %v177_v33  ;;  %v515_v38 = vpack.c.bf16 %v180_v37, %v179_v36  ;;  %v367_v41 = vld [vmem:[%s783_s4] ss:$0 sm:$0xff]  ;;  %vm750_vm3 = vmand %vm162_vm1, %vm163_vm2  ;;  %v181_v48 = vld [vmem:[#allocation7 + $0x40] sm:$0xff] }
  0x40   :  { %508 = vmatprep.subr.bf16.mxu1 %v641_v0  ;;  %v182_v49 = vld [vmem:[#allocation7 + $0x48] sm:$0xff]  ;;  %v183_v51 = vld [vmem:[#allocation7 + $0x50] sm:$0xff]  ;;  %v184_v52 = vld [vmem:[#allocation7 + $0x58] sm:$0xff] }
  0x41   :  { %v518_v50 = vpack.c.bf16 %v182_v49, %v181_v48  ;;  %v185_v53 = vld [vmem:[#allocation7 + $0x60] sm:$0xff]  ;;  %v521_v54 = vpack.c.bf16 %v184_v52, %v183_v51  ;;  %v186_v55 = vld [vmem:[#allocation7 + $0x68] sm:$0xff]  ;;  %v187_v57 = vld [vmem:[#allocation7 + $0x70] sm:$0xff] }
  0x42   :  { %489 = vmatpush3.bf16.msra.mxu0 %v488_v10  ;;  %v524_v56 = vpack.c.bf16 %v186_v55, %v185_v53  ;;  %v188_v58 = vld [vmem:[#allocation7 + $0x78] sm:$0xff] }
  0x43   :  { %490 = vmatprep.subr.bf16.mxu0 %v641_v0  ;;  %510 = vmatpush3.bf16.msra.mxu1 %v509_v32  ;;  %v527_v59 = vpack.c.bf16 %v188_v58, %v187_v57  ;;  %v259_v60 = vld [vmem:[%s781_s2] sm:$0xff] }
  0x44   :  { %511 = vmatprep.subr.bf16.mxu1 %v641_v0  ;;  %v266_v7 = vld [vmem:[#allocation2] sm:$0xff] }
  0x45   :  { %v369_v9 = vld [vmem:[%s785_s6] ss:$0 sm:$0xff] }
  0x46   :  { %492 = vmatpush3.bf16.msra.mxu0 %v491_v13 }
  0x47   :  { %493 = vmatprep.subr.bf16.mxu0 %v641_v0  ;;  %513 = vmatpush3.bf16.msra.mxu1 %v512_v35 }
  0x48   :  { %514 = vmatprep.subr.bf16.mxu1 %v641_v0 }
  0x4a   :  { %495 = vmatpush3.bf16.msra.mxu0 %v494_v16 }
  0x4b   :  { %496 = vmatprep.subr.bf16.mxu0 %v641_v0  ;;  %516 = vmatpush3.bf16.msra.mxu1 %v515_v38 }
  0x4c   :  { %517 = vmatprep.subr.bf16.mxu1 %v641_v0 }
  0x4e   :  { %498 = vmatpush3.bf16.msra.mxu0 %v497_v19 }
  0x4f   :  { %499 = vmatprep.subr.bf16.mxu0 %v641_v0  ;;  %519 = vmatpush3.bf16.msra.mxu1 %v518_v50 }
  0x50   :  { %520 = vmatprep.subr.bf16.mxu1 %v641_v0 }
  0x52   :  { %501 = vmatpush3.bf16.msra.mxu0 %v500_v22 }
  0x53   :  { %502 = vmatprep.subr.bf16.mxu0 %v641_v0  ;;  %522 = vmatpush3.bf16.msra.mxu1 %v521_v54 }
  0x54   :  { %523 = vmatprep.subr.bf16.mxu1 %v641_v0 }
  0x56   :  { %504 = vmatpush3.bf16.msra.mxu0 %v503_v25 }
  0x57   :  { %476 = vmatprep.subr.mxu0 %v643_v1  ;;  %525 = vmatpush3.bf16.msra.mxu1 %v524_v56 }
  0x58   :  { %526 = vmatprep.subr.bf16.mxu1 %v641_v0 }
  0x59   :  { %439 = vmatmul.mubr.f32.vlgmr.msra.gmra.mrb[0].mxu0 %v66_v26 }
  0x5a   :  { %478 = vmatprep.mubr.msk.f32.mxu0 %vm642_vm0, %v643_v1 }
  0x5b   :  { %528 = vmatpush3.bf16.msra.mxu1 %v527_v59 }
 0x12c   :  { %v156_v42 = vpop.f32.mrb[0].mxu0 }
 0x12d   :  { %v157_v43 = vadd.f32 %v367_v41, %v156_v42  ;;  %v440_v44 = vpop.f32.mrb[1].mxu0 }
 0x12f   :  { %v165_v46 = vmul.f32 %v157_v43, %v157_v43 }
 0x131   :  { %v166_v47 = vsel %vm750_vm3, %v165_v46, 0.0 }
 0x132   :  { %167 = vadd.xlane.f32.xlu0 %v166_v47 }
 0x148   :  { %262 = vperm.xlu0 %539, %v259_v60  }
 0x1bf   :  { %v168_v62 = vpop.xlane.xlu0 %167 }
 0x1c0   :  { %v169_v63 = vmax.f32 %v168_v62, 1e-24 }
 0x1c2   :  { %540 = vrsqrt.f32 %v169_v63 }
 0x1c7   :  { %v263_v4 = vpop.permute.xlu0 %262 }
 0x1cc   :  { %v541_v1 = vpop.eup %540 }
 0x1cd   :  { %v171_v2 = vmul.f32 %v541_v1, %v157_v43 }
 0x1cf   :  { %v172_v3 = vsel %vm750_vm3, %v171_v2, %v157_v43 }
 0x1d0   :  { %474 = vmatmul.mubr.f32.vlgmr.msra.gmra.mrb[0].mxu1 %v172_v3 }
 0x2a3   :  { %v255_v5 = vpop.f32.mrb[0].mxu1 }
 0x2a4   :  { %v265_v0 = vmul.f32 %v263_v4, %v255_v5  ;;  %v475_v6 = vpop.f32.mrb[1].mxu1 }
 0x2a6   :  { %477 = vmatpush3.msra.mxu0 %v265_v0 }
 0x2a7   :  { %479 = vmatmul.mubr.msk.f32.vlgmr.msra.gmra.mrb[2].mxu0 %vm267_vm4, %v266_v7 }
 0x37a   :  { %v337_v8 = vpop.f32.mrb[2].mxu0 }
 0x37b   :  { %v341_v10 = vmul.f32 %v337_v8, %v263_v4  ;;  %v480_v11 = vpop.f32.mrb[3].mxu0 }
 0x37d   :  { %v349_v12 = vadd.f32 %v369_v9, %v341_v10 }
 0x37f   :  { %350 = vst [vmem:[#allocation8] sm:$0xff] %v349_v12 }
 0x380   :  { %619 = shalt.err (!%p616_p0)
}
 0x381   :  { %s620_s23 = scalar_lea.hbm %s786_s7, 128 }
 0x382   :  { %p621_p1 = scmp.ne.s32.totalorder %s786_s7, %s620_s23  ;;  %p624_p2 = scmp.lt.u32.totalorder %s620_s23, %s786_s7 }
 0x384   :  { %p626_p3 = pnand %p624_p2, %p621_p1 }
 0x386   :  { %629 = shalt.err (!%p626_p3)
}
 0x387   :  { %360 = dma.vmem_to_hbm [thread:$0]  %s358_s19, 128, %s786_s7, [#allocation4]  }
 0x388   :  { %634 = dma.done.wait [#allocation4], 128  }
 0x389   :  { %635 = vsyncadd [#allocation4], 4294967168 }
 0x38a   :  { %364 = vsyncpa [#allocation3], 1 }
 0x38b   :  { %365 = vsyncpa [#allocation6], 1 }
 0x38c   :  { %366 = vsyncpa [#allocation4], 1 }

</bundles_post_ra>
